<compile_context>
chip_gen: v7x
topology: tpu7x:2x2x1
jax: 0.10.0
libtpu: 0.0.40
codegen_flags: <defaults>
</compile_context>

<pallas_src>
from functools import partial

import jax
import jax.numpy as jnp
from jax.experimental import pallas as pl
from jax.experimental.pallas import tpu as pltpu


def _ceil_to(x, m):
    return ((x + m - 1) // m) * m


def _bias_offsets(H, F, Cseg, FC_H):
    """128-lane-aligned start offsets of (b1, b2c, b3, b4) in the bias slab."""
    ob1 = 0
    ob2 = _ceil_to(ob1 + H, 128)
    ob3 = _ceil_to(ob2 + F + Cseg, 128)
    ob4 = _ceil_to(ob3 + FC_H, 128)
    total = _ceil_to(ob4 + 128, 128)  # generous tail (OUT <= 128)
    return (ob1, ob2, ob3, ob4), total


# ----------------------------------------------------------------------------
# Fused kernel: per-point MLP + max-pool + seg head + fc head.
# One grid step == one batch element (parallel across TCs on v7x).
# ----------------------------------------------------------------------------
def fused_kernel(dims, p_ref, obs_ref, w1_ref, w2c_ref, w3_ref, w4_ref, b_ref,
                 y2_ref, y1_ref, seg_ref):
    F, CSEG, OBS, H, FC_H, OUT, OB1, OB2, OB3, OB4 = dims

    # ---- per-point hidden: relu(P @ W1 + b1)                 [N, H]
    p16 = p_ref[...].astype(jnp.bfloat16)                # in-kernel cast (VPU)
    h = jnp.dot(p16, w1_ref[...], preferred_element_type=jnp.float32)
    h = jnp.maximum(h + b_ref[:, OB1:OB1 + H], 0.0)

    # ---- feature + seg logits in one MXU pass                [N, F+Cseg]
    fs = (jnp.dot(h.astype(jnp.bfloat16), w2c_ref[...],
                  preferred_element_type=jnp.float32)
          + b_ref[:, OB2:OB2 + F + CSEG])
    feat = fs[:, :F]                                     # lane-aligned slice
    seg_ref[...] = fs[:, F:F + CSEG]                     # tiny masked store, OK

    # ---- global feature: max-pool over the N points          [1, F]
    y1 = jnp.max(feat, axis=0, keepdims=True)
    y1_ref[...] = y1

    # ---- fc head: cat(obs, y1.detach()) @ W3 == obs @ W3[:OBS] + y1 @ W3[OBS:]
    # (detach only affects gradients; forward value identical.)
    obs16 = obs_ref[...].astype(jnp.bfloat16)            # in-kernel cast
    w3o = w3_ref[0:OBS, :]                               # sublane-aligned slices
    w3f = w3_ref[OBS:OBS + F, :]
    h2 = (jnp.dot(obs16, w3o, preferred_element_type=jnp.float32)
          + jnp.dot(y1.astype(jnp.bfloat16), w3f,
                    preferred_element_type=jnp.float32)
          + b_ref[:, OB3:OB3 + FC_H])
    h2 = jnp.maximum(h2, 0.0)
    y2_ref[...] = (jnp.dot(h2.astype(jnp.bfloat16), w4_ref[...],
                           preferred_element_type=jnp.float32)
                   + b_ref[:, OB4:OB4 + OUT])


# ----------------------------------------------------------------------------
# Wrapper: one fused pallas_call, grid over the batch.
# ----------------------------------------------------------------------------
def mynet_pc_forward(points, obs, params):
    B, N, PT_DIM = points.shape
    OBS = obs.shape[1]
    H = params["w1p"].shape[1]
    FC_H = params["w3"].shape[1]
    F = params["w3"].shape[0] - OBS
    CSEG = params["w2c"].shape[1] - F
    OUT = params["w4"].shape[1]
    (ob1, ob2, ob3, ob4), _ = _bias_offsets(H, F, CSEG, FC_H)

    obs3 = obs.reshape(B, 1, OBS)          # free reshape -> fully aligned block

    dims = (F, CSEG, OBS, H, FC_H, OUT, ob1, ob2, ob3, ob4)
    kernel = partial(fused_kernel, dims)

    flops = 2 * B * (N * PT_DIM * H + N * H * (F + CSEG)
                     + OBS * FC_H + F * FC_H + FC_H * OUT)
    bytes_accessed = (points.size * 4 + obs.size * 4
                      + sum(int(v.size) * v.dtype.itemsize
                            for v in params.values())
                      + B * OUT * 4 + B * F * 4 + B * N * CSEG * 4)

    const2d = lambda b: (0, 0)
    per_batch = lambda b: (b, 0, 0)

    y2, y1, seg = pl.pallas_call(
        kernel,
        grid=(B,),
        in_specs=[
            pl.BlockSpec((None, N, PT_DIM), per_batch),        # points (f32)
            pl.BlockSpec((None, 1, OBS), per_batch),           # obs    (f32)
            pl.BlockSpec(params["w1p"].shape, const2d),        # W1  (bf16)
            pl.BlockSpec(params["w2c"].shape, const2d),        # [W2|Wseg] (bf16)
            pl.BlockSpec(params["w3"].shape, const2d),         # W3  (bf16)
            pl.BlockSpec(params["w4"].shape, const2d),         # W4  (bf16)
            pl.BlockSpec(params["biases"].shape, const2d),     # packed biases
        ],
        out_specs=(
            pl.BlockSpec((None, 1, OUT), per_batch),           # y2
            pl.BlockSpec((None, 1, F), per_batch),             # y1 (feature)
            pl.BlockSpec((None, N, CSEG), per_batch),          # seg_preds
        ),
        out_shape=(
            jax.ShapeDtypeStruct((B, 1, OUT), jnp.float32),
            jax.ShapeDtypeStruct((B, 1, F), jnp.float32),
            jax.ShapeDtypeStruct((B, N, CSEG), jnp.float32),
        ),
        compiler_params=pltpu.CompilerParams(
            dimension_semantics=("parallel",)),
        cost_estimate=pl.CostEstimate(flops=flops, transcendentals=0,
                                      bytes_accessed=bytes_accessed),
    )(points, obs3, params["w1p"], params["w2c"], params["w3"], params["w4"],
      params["biases"])

    y2 = y2.reshape(B, OUT)
    # TODO(synk): pallas_call defines no VJP; if a backward pass is added, it
    # must exclude y1's contribution to y2 (reference detaches y1 before fc).
    y1_det = jax.lax.stop_gradient(y1.reshape(B, F))
    return y2, {"feature": y1_det, "seg_preds": seg}


# ----------------------------------------------------------------------------
# Synthetic weights (backbone/fc are injected modules in the reference).
# ----------------------------------------------------------------------------
def init_raw_params(key, cin=6, hidden=64, feat=128, cseg=4,
                    obs_dim=32, fc_hidden=64, out_dim=8):
    ks = jax.random.split(key, 5)
    s = 0.1
    return {
        "w1": s * jax.random.normal(ks[0], (cin, hidden), jnp.float32),
        "b1": jnp.zeros((1, hidden), jnp.float32),
        "w2": s * jax.random.normal(ks[1], (hidden, feat), jnp.float32),
        "b2": jnp.zeros((1, feat), jnp.float32),
        "wseg": s * jax.random.normal(ks[2], (hidden, cseg), jnp.float32),
        "bseg": jnp.zeros((1, cseg), jnp.float32),
        "w3": s * jax.random.normal(ks[3], (obs_dim + feat, fc_hidden),
                                    jnp.float32),
        "b3": jnp.zeros((1, fc_hidden), jnp.float32),
        "w4": s * jax.random.normal(ks[4], (fc_hidden, out_dim), jnp.float32),
        "b4": jnp.zeros((1, out_dim), jnp.float32),
    }


def prepare_params(raw, pt_dim):
    """Pad / merge the raw weights into the fused-kernel layout (arrays only)."""
    cin, hidden = raw["w1"].shape
    feat = raw["w2"].shape[1]
    cseg = raw["wseg"].shape[1]
    fc_hidden = raw["w3"].shape[1]
    out_dim = raw["w4"].shape[1]

    # Zero-pad w1 rows: raw PT_DIM-wide points feed the kernel directly
    # (equivalent to the reference's points[:, :, :6] slice).
    w1p = jnp.zeros((pt_dim, hidden), jnp.float32).at[:cin, :].set(raw["w1"])
    # Merge feature head and seg head into one weight.
    w2c = jnp.concatenate([raw["w2"], raw["wseg"]], axis=1)

    # Pack the four f32 biases into one slab, each at a 128-lane boundary.
    (ob1, ob2, ob3, ob4), total = _bias_offsets(hidden, feat, cseg, fc_hidden)
    biases = jnp.zeros((1, total), jnp.float32)
    biases = biases.at[:, ob1:ob1 + hidden].set(raw["b1"])
    biases = biases.at[:, ob2:ob2 + feat + cseg].set(
        jnp.concatenate([raw["b2"], raw["bseg"]], axis=1))
    biases = biases.at[:, ob3:ob3 + fc_hidden].set(raw["b3"])
    biases = biases.at[:, ob4:ob4 + out_dim].set(raw["b4"])

    bf16 = jnp.bfloat16
    return {
        "w1p": w1p.astype(bf16),
        "w2c": w2c.astype(bf16),
        "w3": raw["w3"].astype(bf16),
        "w4": raw["w4"].astype(bf16),
        "biases": biases,
    }


# ----------------------------------------------------------------------------
# Pure-JAX f32 reference (mirrors the PyTorch forward).
# ----------------------------------------------------------------------------
def reference_forward(points, obs, raw, cin=6):
    p = points[:, :, :cin]
    h = jax.nn.relu(jnp.einsum("bnc,ch->bnh", p, raw["w1"]) + raw["b1"])
    feat = jnp.einsum("bnh,hf->bnf", h, raw["w2"]) + raw["b2"]
    seg = jnp.einsum("bnh,hc->bnc", h, raw["wseg"]) + raw["bseg"]
    y1 = feat.max(axis=1)
    h2 = jax.nn.relu(jnp.concatenate([obs, y1], axis=1) @ raw["w3"] + raw["b3"])
    y2 = h2 @ raw["w4"] + raw["b4"]
    return y2, y1, seg


if __name__ == "__main__":
    key = jax.random.PRNGKey(0)
    kp, ko, kw = jax.random.split(key, 3)

    B, N = 2, 128          # batch, num points
    PT_DIM = 7             # raw point dim; reference slices [:, :, :6]
    OBS_DIM = 32

    points = jax.random.normal(kp, (B, N, PT_DIM), jnp.float32)
    obs = jax.random.normal(ko, (B, OBS_DIM), jnp.float32)

    raw = init_raw_params(kw, obs_dim=OBS_DIM)
    params = prepare_params(raw, pt_dim=PT_DIM)

    fwd = jax.jit(mynet_pc_forward)
    y2, others = fwd(points, obs, params)
    jax.block_until_ready(y2)
    jax.block_until_ready(others["feature"])
    jax.block_until_ready(others["seg_preds"])

    assert y2.shape == (B, 8)
    assert others["feature"].shape == (B, 128)
    assert others["seg_preds"].shape == (B, N, 4)

    # Loose numerical check vs f32 reference (kernel uses bf16 on the MXU).
    ref_y2, ref_y1, ref_seg = reference_forward(points, obs, raw)
    assert float(jnp.max(jnp.abs(y2 - ref_y2))) < 5e-2
    assert float(jnp.max(jnp.abs(others["feature"] - ref_y1))) < 5e-2
    assert float(jnp.max(jnp.abs(others["seg_preds"] - ref_seg))) < 5e-2

    print("KERNEL_OK")
</pallas_src>

<mosaic_0001>
module attributes {stable_mosaic.version = 11 : i64} {
  func.func @fused_kernel(%arg0: i32, %arg1: memref<1x128x7xf32, #tpu.memory_space<vmem>>, %arg2: memref<1x1x32xf32, #tpu.memory_space<vmem>>, %arg3: memref<7x64xbf16, #tpu.memory_space<vmem>>, %arg4: memref<64x132xbf16, #tpu.memory_space<vmem>>, %arg5: memref<160x64xbf16, #tpu.memory_space<vmem>>, %arg6: memref<64x8xbf16, #tpu.memory_space<vmem>>, %arg7: memref<1x640xf32, #tpu.memory_space<vmem>>, %arg8: memref<1x1x8xf32, #tpu.memory_space<vmem>>, %arg9: memref<1x1x128xf32, #tpu.memory_space<vmem>>, %arg10: memref<1x128x4xf32, #tpu.memory_space<vmem>>) attributes {dimension_semantics = [#tpu.dimension_semantics<parallel>], iteration_bounds = array<i64: 2>, scalar_prefetch = 0 : i64, scratch_operands = 0 : i64, tpu.core_type = #tpu.core_type<tc>, window_params = [{transform_indices = @transform_0, window_bounds = array<i64: 1, 128, 7>}, {transform_indices = @transform_1, window_bounds = array<i64: 1, 1, 32>}, {pipeline_mode = #tpu.pipeline_mode<synchronous>, transform_indices = @transform_2, window_bounds = array<i64: 7, 64>}, {pipeline_mode = #tpu.pipeline_mode<synchronous>, transform_indices = @transform_3, window_bounds = array<i64: 64, 132>}, {pipeline_mode = #tpu.pipeline_mode<synchronous>, transform_indices = @transform_4, window_bounds = array<i64: 160, 64>}, {pipeline_mode = #tpu.pipeline_mode<synchronous>, transform_indices = @transform_5, window_bounds = array<i64: 64, 8>}, {pipeline_mode = #tpu.pipeline_mode<synchronous>, transform_indices = @transform_6, window_bounds = array<i64: 1, 640>}, {transform_indices = @transform_7, window_bounds = array<i64: 1, 1, 8>}, {transform_indices = @transform_8, window_bounds = array<i64: 1, 1, 128>}, {transform_indices = @transform_9, window_bounds = array<i64: 1, 128, 4>}]} {
    %c0 = arith.constant 0 : index
    %c0_0 = arith.constant 0 : index
    %c0_1 = arith.constant 0 : index
    %0 = vector.load %arg1[%c0, %c0_0, %c0_1] : memref<1x128x7xf32, #tpu.memory_space<vmem>>, vector<1x128x7xf32>
    %1 = vector.shape_cast %0 : vector<1x128x7xf32> to vector<128x7xf32>
    %2 = arith.truncf %1 : vector<128x7xf32> to vector<128x7xbf16>
    %c0_2 = arith.constant 0 : index
    %c0_3 = arith.constant 0 : index
    %3 = vector.load %arg3[%c0_2, %c0_3] : memref<7x64xbf16, #tpu.memory_space<vmem>>, vector<7x64xbf16>
    %cst = arith.constant dense<0.000000e+00> : vector<128x64xf32>
    %4 = tpu.matmul %2, %3, %cst {dimension_numbers = #tpu.dot_dimension_numbers<[1], [0], [0], [1], [0, 0, 1, 1], [], []>} : vector<128x7xbf16>, vector<7x64xbf16>, vector<128x64xf32> -> vector<128x64xf32>
    %c0_4 = arith.constant 0 : index
    %c0_5 = arith.constant 0 : index
    %5 = vector.load %arg7[%c0_4, %c0_5] : memref<1x640xf32, #tpu.memory_space<vmem>>, vector<1x64xf32>
    %6 = vector.broadcast %5 : vector<1x64xf32> to vector<128x64xf32>
    %7 = arith.addf %4, %6 : vector<128x64xf32>
    %cst_6 = arith.constant 0.000000e+00 : f32
    %8 = vector.broadcast %cst_6 : f32 to vector<128x64xf32>
    %9 = arith.maximumf %7, %8 : vector<128x64xf32>
    %10 = arith.truncf %9 : vector<128x64xf32> to vector<128x64xbf16>
    %c0_7 = arith.constant 0 : index
    %c0_8 = arith.constant 0 : index
    %11 = vector.load %arg4[%c0_7, %c0_8] : memref<64x132xbf16, #tpu.memory_space<vmem>>, vector<64x132xbf16>
    %cst_9 = arith.constant dense<0.000000e+00> : vector<128x132xf32>
    %12 = tpu.matmul %10, %11, %cst_9 {dimension_numbers = #tpu.dot_dimension_numbers<[1], [0], [0], [1], [0, 0, 1, 1], [], []>} : vector<128x64xbf16>, vector<64x132xbf16>, vector<128x132xf32> -> vector<128x132xf32>
    %c0_10 = arith.constant 0 : index
    %c128 = arith.constant 128 : index
    %13 = vector.load %arg7[%c0_10, %c128] : memref<1x640xf32, #tpu.memory_space<vmem>>, vector<1x132xf32>
    %14 = vector.broadcast %13 : vector<1x132xf32> to vector<128x132xf32>
    %15 = arith.addf %12, %14 : vector<128x132xf32>
    %16 = vector.extract_strided_slice %15 {offsets = [0, 0], sizes = [128, 128], strides = [1, 1]} : vector<128x132xf32> to vector<128x128xf32>
    %17 = vector.extract_strided_slice %15 {offsets = [0, 128], sizes = [128, 4], strides = [1, 1]} : vector<128x132xf32> to vector<128x4xf32>
    %c0_11 = arith.constant 0 : index
    %c0_12 = arith.constant 0 : index
    %c0_13 = arith.constant 0 : index
    %18 = vector.load %arg10[%c0_11, %c0_12, %c0_13] : memref<1x128x4xf32, #tpu.memory_space<vmem>>, vector<1x128x4xf32>
    %19 = vector.shape_cast %18 : vector<1x128x4xf32> to vector<128x4xf32>
    %20 = vector.shape_cast %17 : vector<128x4xf32> to vector<1x128x4xf32>
    tpu.vector_store %arg10[%c0_11, %c0_12, %c0_13], %20 {strides = array<i32>} : memref<1x128x4xf32, #tpu.memory_space<vmem>>, vector<1x128x4xf32>,
    %cst_14 = arith.constant dense<0xFF800000> : vector<128xf32>
    %21 = vector.multi_reduction <maximumf>, %16, %cst_14 [0] : vector<128x128xf32> to vector<128xf32>
    %22 = vector.shape_cast %21 : vector<128xf32> to vector<1x128xf32>
    %c0_15 = arith.constant 0 : index
    %c0_16 = arith.constant 0 : index
    %c0_17 = arith.constant 0 : index
    %23 = vector.load %arg9[%c0_15, %c0_16, %c0_17] : memref<1x1x128xf32, #tpu.memory_space<vmem>>, vector<1x1x128xf32>
    %24 = vector.shape_cast %23 : vector<1x1x128xf32> to vector<1x128xf32>
    %25 = vector.shape_cast %22 : vector<1x128xf32> to vector<1x1x128xf32>
    tpu.vector_store %arg9[%c0_15, %c0_16, %c0_17], %25 {strides = array<i32>} : memref<1x1x128xf32, #tpu.memory_space<vmem>>, vector<1x1x128xf32>,
    %c0_18 = arith.constant 0 : index
    %c0_19 = arith.constant 0 : index
    %c0_20 = arith.constant 0 : index
    %26 = vector.load %arg2[%c0_18, %c0_19, %c0_20] : memref<1x1x32xf32, #tpu.memory_space<vmem>>, vector<1x1x32xf32>
    %27 = vector.shape_cast %26 : vector<1x1x32xf32> to vector<1x32xf32>
    %28 = arith.truncf %27 : vector<1x32xf32> to vector<1x32xbf16>
    %c0_21 = arith.constant 0 : index
    %c0_22 = arith.constant 0 : index
    %29 = vector.load %arg5[%c0_21, %c0_22] : memref<160x64xbf16, #tpu.memory_space<vmem>>, vector<32x64xbf16>
    %c32 = arith.constant 32 : index
    %c0_23 = arith.constant 0 : index
    %30 = vector.load %arg5[%c32, %c0_23] : memref<160x64xbf16, #tpu.memory_space<vmem>>, vector<128x64xbf16>
    %cst_24 = arith.constant dense<0.000000e+00> : vector<1x64xf32>
    %31 = tpu.matmul %28, %29, %cst_24 {dimension_numbers = #tpu.dot_dimension_numbers<[1], [0], [0], [1], [0, 0, 1, 1], [], []>} : vector<1x32xbf16>, vector<32x64xbf16>, vector<1x64xf32> -> vector<1x64xf32>
    %32 = arith.truncf %22 : vector<1x128xf32> to vector<1x128xbf16>
    %cst_25 = arith.constant dense<0.000000e+00> : vector<1x64xf32>
    %33 = tpu.matmul %32, %30, %cst_25 {dimension_numbers = #tpu.dot_dimension_numbers<[1], [0], [0], [1], [0, 0, 1, 1], [], []>} : vector<1x128xbf16>, vector<128x64xbf16>, vector<1x64xf32> -> vector<1x64xf32>
    %34 = arith.addf %31, %33 : vector<1x64xf32>
    %c0_26 = arith.constant 0 : index
    %c384 = arith.constant 384 : index
    %35 = vector.load %arg7[%c0_26, %c384] : memref<1x640xf32, #tpu.memory_space<vmem>>, vector<1x64xf32>
    %36 = arith.addf %34, %35 : vector<1x64xf32>
    %cst_27 = arith.constant 0.000000e+00 : f32
    %37 = vector.broadcast %cst_27 : f32 to vector<1x64xf32>
    %38 = arith.maximumf %36, %37 : vector<1x64xf32>
    %39 = arith.truncf %38 : vector<1x64xf32> to vector<1x64xbf16>
    %c0_28 = arith.constant 0 : index
    %c0_29 = arith.constant 0 : index
    %40 = vector.load %arg6[%c0_28, %c0_29] : memref<64x8xbf16, #tpu.memory_space<vmem>>, vector<64x8xbf16>
    %cst_30 = arith.constant dense<0.000000e+00> : vector<1x8xf32>
    %41 = tpu.matmul %39, %40, %cst_30 {dimension_numbers = #tpu.dot_dimension_numbers<[1], [0], [0], [1], [0, 0, 1, 1], [], []>} : vector<1x64xbf16>, vector<64x8xbf16>, vector<1x8xf32> -> vector<1x8xf32>
    %c0_31 = arith.constant 0 : index
    %c512 = arith.constant 512 : index
    %42 = vector.load %arg7[%c0_31, %c512] : memref<1x640xf32, #tpu.memory_space<vmem>>, vector<1x8xf32>
    %43 = arith.addf %41, %42 : vector<1x8xf32>
    %c0_32 = arith.constant 0 : index
    %c0_33 = arith.constant 0 : index
    %c0_34 = arith.constant 0 : index
    %44 = vector.load %arg8[%c0_32, %c0_33, %c0_34] : memref<1x1x8xf32, #tpu.memory_space<vmem>>, vector<1x1x8xf32>
    %45 = vector.shape_cast %44 : vector<1x1x8xf32> to vector<1x8xf32>
    %46 = vector.shape_cast %43 : vector<1x8xf32> to vector<1x1x8xf32>
    tpu.vector_store %arg8[%c0_32, %c0_33, %c0_34], %46 {strides = array<i32>} : memref<1x1x8xf32, #tpu.memory_space<vmem>>, vector<1x1x8xf32>,
    return
  }
  func.func @transform_0(%arg0: i32) -> (i32, i32, i32) {
    %c0_i32 = arith.constant 0 : i32
    %c0_i32_0 = arith.constant 0 : i32
    %c0_i32_1 = arith.constant 0 : i32
    return %arg0, %c0_i32, %c0_i32_0 : i32, i32, i32
  }
  func.func @transform_1(%arg0: i32) -> (i32, i32, i32) {
    %c0_i32 = arith.constant 0 : i32
    %c0_i32_0 = arith.constant 0 : i32
    %c0_i32_1 = arith.constant 0 : i32
    return %arg0, %c0_i32, %c0_i32_0 : i32, i32, i32
  }
  func.func @transform_2(%arg0: i32) -> (i32, i32) {
    %c0_i32 = arith.constant 0 : i32
    %c0_i32_0 = arith.constant 0 : i32
    %c0_i32_1 = arith.constant 0 : i32
    return %c0_i32, %c0_i32_0 : i32, i32
  }
  func.func @transform_3(%arg0: i32) -> (i32, i32) {
    %c0_i32 = arith.constant 0 : i32
    %c0_i32_0 = arith.constant 0 : i32
    %c0_i32_1 = arith.constant 0 : i32
    return %c0_i32, %c0_i32_0 : i32, i32
  }
  func.func @transform_4(%arg0: i32) -> (i32, i32) {
    %c0_i32 = arith.constant 0 : i32
    %c0_i32_0 = arith.constant 0 : i32
    %c0_i32_1 = arith.constant 0 : i32
    return %c0_i32, %c0_i32_0 : i32, i32
  }
  func.func @transform_5(%arg0: i32) -> (i32, i32) {
    %c0_i32 = arith.constant 0 : i32
    %c0_i32_0 = arith.constant 0 : i32
    %c0_i32_1 = arith.constant 0 : i32
    return %c0_i32, %c0_i32_0 : i32, i32
  }
  func.func @transform_6(%arg0: i32) -> (i32, i32) {
    %c0_i32 = arith.constant 0 : i32
    %c0_i32_0 = arith.constant 0 : i32
    %c0_i32_1 = arith.constant 0 : i32
    return %c0_i32, %c0_i32_0 : i32, i32
  }
  func.func @transform_7(%arg0: i32) -> (i32, i32, i32) {
    %c0_i32 = arith.constant 0 : i32
    %c0_i32_0 = arith.constant 0 : i32
    %c0_i32_1 = arith.constant 0 : i32
    return %arg0, %c0_i32, %c0_i32_0 : i32, i32, i32
  }
  func.func @transform_8(%arg0: i32) -> (i32, i32, i32) {
    %c0_i32 = arith.constant 0 : i32
    %c0_i32_0 = arith.constant 0 : i32
    %c0_i32_1 = arith.constant 0 : i32
    return %arg0, %c0_i32, %c0_i32_0 : i32, i32, i32
  }
  func.func @transform_9(%arg0: i32) -> (i32, i32, i32) {
    %c0_i32 = arith.constant 0 : i32
    %c0_i32_0 = arith.constant 0 : i32
    %c0_i32_1 = arith.constant 0 : i32
    return %arg0, %c0_i32, %c0_i32_0 : i32, i32, i32
  }
}

</mosaic_0001>

<bundles_post_ra>
// kernel: mynet_pc_forward.1
= control target key start
LH: loop header
LB: loop body
LE: loop exit
PB: predicated region body
PF: predicated region fallthrough
CT: control target
= control target key end

     0   :  { %15 = vsyncpa [#allocation3], 0  ;;  %s1922_s0 = inlined_call_operand.vmem [shape: f32[2,128,7], index: 0, kind: input, shape index: {}]   ;;  %s1923_s1 = inlined_call_operand.vmem [shape: f32[2,1,32], index: 1, kind: input, shape index: {}]   ;;  %s1924_s2 = inlined_call_operand.vmem [shape: bf16[7,64], index: 2, kind: input, shape index: {}]   ;;  %s1925_s3 = inlined_call_operand.vmem [shape: bf16[64,132], index: 3, kind: input, shape index: {}]   ;;  %s1926_s4 = inlined_call_operand.vmem [shape: bf16[160,64], index: 4, kind: input, shape index: {}]   ;;  %s1927_s5 = inlined_call_operand.vmem [shape: bf16[64,8], index: 5, kind: input, shape index: {}]   ;;  %s1928_s6 = inlined_call_operand.vmem [shape: f32[1,640], index: 6, kind: input, shape index: {}]   ;;  %s1929_s7 = inlined_call_operand.hbm [shape: f32[2,1,8], index: 7, kind: output, shape index: {0}]   ;;  %s1930_s8 = inlined_call_operand.hbm [shape: f32[2,1,128], index: 8, kind: output, shape index: {1}]   ;;  %s1931_s9 = inlined_call_operand.vmem [shape: f32[2,128,4], index: 9, kind: output, shape index: {2}]  }
   0x1   :  { %17 = vsyncpa [#allocation3 + $0x1], 0 }
   0x2   :  { %18 = vsyncpa [#allocation5], 0 }
   0x3   :  { %20 = vsyncpa [#allocation5 + $0x1], 0  ;;  %s1558_s30 = smov 0   ;;  %s1560_s10 = smov 0  }
   0x4   :  { %s1562_s11 = smov 0   ;;  %s1564_s12 = smov 0  }
   0x5 LB: > { %s1579_s13 = sadd.s32 4294967295, %s1500_s12   ;;  %s1193_s14 = sadd.s32 4294967294, %s1500_s12   ;;  %s1500_s12 = sphi %s1564_s12, %s1939_s12   ;;  %s1496_s11 = sphi %s1562_s11, %s1938_s11   ;;  %s1492_s10 = sphi %s1560_s10, %s1937_s10   ;;  %s1488_s30 = sphi %s1558_s30, %s1936_s30  }
   0x6   : > { %s1583_s15 = sadd.s32 1, %s1500_s12   ;;  %s190_s16 = sadd.s32 1, %s1496_s11 }
   0x7   : > { %s187_s17 = ssub.s32 %s1500_s12, %s1583_s15  ;;  %p200_p0 = scmp.ne.s32.totalorder %s1496_s11, %s1492_s10 }
   0x8   : > { %p188_p1 = scmp.eq.s32.totalorder %s187_s17, 0  ;;  %p201_p2 = scmp.eq.s32.totalorder %s1579_s13, 1 }
   0x9   : > { %p206_p3 = scmp.ne.s32.totalorder %s1492_s10, %s1488_s30  ;;  %p207_p4 = scmp.eq.s32.totalorder %s1193_s14, 1 }
   0xa   : > { %s1594_s18 = scalar_select %p188_p1, %s1496_s11, %s190_s16  }
   0xb   : > { %p1596_p5 = por %p201_p2, %p200_p0  ;;  %p1600_p6 = por %p207_p4, %p206_p3 }
   0xc   : > { %p1196_p7 = scmp.ge.s32.totalorder %s1500_s12, 1  ;;  %p306_p8 = scmp.lt.s32.totalorder %s1500_s12, 3 }
   0xe   : > { %p307_p9 = pnand %p1196_p7, %p306_p8 }
   0xf   : > { %v391_v0 = vld [vmem:[%s1924_s2] sm:$0xf] (!%p307_p9)  ;;  %vm424_vm0 = vcmask (!%p307_p9), 1042432   ;;  %vm425_vm1 = vcmask (!%p307_p9), 1043456   ;;  %p353_p10 = scmp.lt.s32.totalorder (!%p307_p9), %s1579_s13, 1  ;;  %v1502_v1 = vmov (!%p307_p9), 65535  }
  0x10   : > { %310 = sbr.rel (%p307_p9) target bundleno = 1000 (0x3e8), region = 48  ;;  %v426_v2 = vsel (!%p307_p9), %vm424_vm0, 4294967295, %v1502_v1  ;;  %v1380_v3 = vld [vmem:[%s1925_s3 + $0x4] ss:$8 sps:$4 sm:$0xff] (!%p307_p9)   ;;  %v1382_v5 = vld [vmem:[%s1925_s3] ss:$8 sps:$4 sm:$0xff] (!%p307_p9)  }
  0x11   : > { %v427_v4 = vsel (!%p307_p9), %vm425_vm1, %v426_v2, 0  ;;  %637 = vmatprep.subr.bf16.mxu1 (!%p307_p9), %v1380_v3  ;;  %v1383_v7 = vld [vmem:[%s1925_s3 + $0x14] ss:$8 sps:$4 sm:$0xff] (!%p307_p9)   ;;  %v1385_v8 = vld [vmem:[%s1925_s3 + $0x10] ss:$8 sps:$4 sm:$0xff] (!%p307_p9)   ;;  %vm399_vm2 = vcmask (!%p307_p9), 56320  }
  0x12   : > { %v429_v6 = vand.u32 (!%p307_p9), %v427_v4, %v391_v0  ;;  %638 = vmatpush1.bf16.msra.mxu1 (!%p307_p9), %v1382_v5  ;;  %v1386_v33 = vld [vmem:[%s1925_s3 + $0x24] ss:$8 sps:$4 sm:$0xff] (!%p307_p9)   ;;  %v1388_v34 = vld [vmem:[%s1925_s3 + $0x20] ss:$8 sps:$4 sm:$0xff] (!%p307_p9)   ;;  %v1389_v35 = vld [vmem:[%s1925_s3 + $0x34] ss:$8 sps:$4 sm:$0xff] (!%p307_p9)  }
  0x13   : > { %639 = vmatprep.subr.bf16.mxu1 (!%p307_p9), %v1383_v7  ;;  %v1391_v36 = vld [vmem:[%s1925_s3 + $0x30] ss:$8 sps:$4 sm:$0xff] (!%p307_p9)   ;;  %v1503_v37 = vmov (!%p307_p9), 0   ;;  %v1201_v38 = vld [vmem:[%s1928_s6] ss:$0 sm:$0xff] (!%p307_p9)  ;;  %vm612_vm3 = vcmask (!%p307_p9), 523264  }
  0x14   : > { %1274 = vmatprep.subr.bf16.mxu0 (!%p307_p9), %v429_v6  ;;  %669 = vmatprep.mubr.bf16.mxu1 (!%p307_p9), %v1503_v37  ;;  %vm1505_vm4 = vmmov (!%p307_p9), 0   ;;  %vm750_vm5 = vcmask (!%p307_p9), 31744   ;;  %vm912_vm6 = vcmask (!%p307_p9), 261120  }
  0x15   : > { %1275 = vmatpush3.bf16.msra.mxu0 (!%p307_p9), %v429_v6 }
  0x16   : > { %640 = vmatpush1.bf16.msra.mxu1 (!%p307_p9), %v1385_v8 }
  0x17   : > { %s1614_s25 = scalar_select %p353_p10, %s1579_s13, 1  ;;  %641 = vmatprep.subr.bf16.mxu1 %v1386_v33  ;;  %v1393_v33 = vld [vmem:[%s1926_s4 + $0x18] sm:$0xff]  }
  0x19   : > { %s1246_s17 = sshll.u32 %s1614_s25, 7  ;;  %s360_s14 = scalar_lea.vmem %s1923_s1, %s1614_s25 }
  0x1a   : > { %s1631_s23 = scalar_lea.vmem %s1922_s0, %s1246_s17  ;;  %642 = vmatpush1.bf16.msra.mxu1 %v1388_v34  ;;  %v1394_v34 = vld [vmem:[%s1926_s4 + $0x20] sm:$0xff]   ;;  %s1733_s24 = scalar_lea.vmem %s1931_s9, %s1246_s17 }
  0x1b   : > { %v367_v9 = vld [vmem:[%s1631_s23] sm:$0xff]  ;;  %v368_v10 = vld [vmem:[%s1631_s23 + $0x8] sm:$0xff]  ;;  %v369_v11 = vld [vmem:[%s1631_s23 + $0x10] sm:$0xff]  ;;  %643 = vmatprep.subr.bf16.mxu1 %v1389_v35  ;;  %s1802_s17 = sand.u32 1, %s1492_s10   ;;  %s1932_s25 = sshll.u32 %s1579_s13, 4 }
  0x1c   : > { %v383_v12 = vpack.c.bf16 %v368_v10, %v367_v9  ;;  %v370_v13 = vld [vmem:[%s1631_s23 + $0x18] sm:$0xff]  ;;  %v371_v14 = vld [vmem:[%s1631_s23 + $0x20] sm:$0xff]  ;;  %v372_v15 = vld [vmem:[%s1631_s23 + $0x28] sm:$0xff]  ;;  %s345_s16 = scalar_lea.vmem [#allocation4], %s1802_s17  ;;  %s1848_s26 = scalar_lea.hbm %s1930_s8, %s1932_s25 }
  0x1d   : > { %v384_v16 = vpack.c.bf16 %v370_v13, %v369_v11  ;;  %v385_v17 = vpack.c.bf16 %v372_v15, %v371_v14  ;;  %v373_v18 = vld [vmem:[%s1631_s23 + $0x30] sm:$0xff]  ;;  %v374_v19 = vld [vmem:[%s1631_s23 + $0x38] sm:$0xff]  ;;  %v375_v20 = vld [vmem:[%s1631_s23 + $0x40] sm:$0xff]  ;;  %s1073_s27 = sshll.u32 %s345_s16, 4  ;;  %s1043_s28 = scalar_lea.sflag [#allocation5], %s1802_s17  ;;  %s1074_s27 = int_to_ptr.vmem [resolvable:$true] %s1073_s27 }
  0x1e   : > { %1276 = vmatprep.mubr.msk.bf16.mxu0 %vm399_vm2, %v383_v12  ;;  %v376_v21 = vld [vmem:[%s1631_s23 + $0x48] sm:$0xff]  ;;  %v386_v22 = vpack.c.bf16 %v374_v19, %v373_v18  ;;  %v377_v24 = vld [vmem:[%s1631_s23 + $0x50] sm:$0xff]  ;;  %v378_v25 = vld [vmem:[%s1631_s23 + $0x58] sm:$0xff]  ;;  %644 = vmatpush1.bf16.msra.mxu1 %v1391_v36  ;;  %s1406_s29 = scalar_lea.vmem %s1074_s27, 16 }
  0x1f   : > { %1277 = vmatmul.mubr.msk.bf16.vlgmr.msra.gmra.mrb[0].mxu0 %vm399_vm2, %v384_v16  ;;  %v387_v23 = vpack.c.bf16 %v376_v21, %v375_v20  ;;  %v379_v26 = vld [vmem:[%s1631_s23 + $0x60] sm:$0xff]  ;;  %v380_v27 = vld [vmem:[%s1631_s23 + $0x68] sm:$0xff]  ;;  %v388_v28 = vpack.c.bf16 %v378_v25, %v377_v24  ;;  %v381_v30 = vld [vmem:[%s1631_s23 + $0x70] sm:$0xff]  ;;  %p1407_p11 = scmp.ne.s32.totalorder %s1074_s27, %s1406_s29 }
  0x20   : > { %1280 = vmatprep.mubr.msk.bf16.mxu0 %vm399_vm2, %v385_v17  ;;  %v389_v29 = vpack.c.bf16 %v380_v27, %v379_v26  ;;  %v382_v31 = vld [vmem:[%s1631_s23 + $0x78] sm:$0xff]  ;;  %v1395_v35 = vld [vmem:[%s1926_s4 + $0x28] sm:$0xff]   ;;  %v1396_v36 = vld [vmem:[%s1926_s4 + $0x30] sm:$0xff]  }
  0x21   : > { %v390_v32 = vpack.c.bf16 %v382_v31, %v381_v30  ;;  %v1392_v31 = vld [vmem:[%s1926_s4 + $0x10] sm:$0xff]   ;;  %p1408_p12 = pnand %p1407_p11, %p1596_p5 }
  0x23   : > { %p1409_p13 = pneg %p1408_p12 }
  0x27   : > { %1281 = vmatmul.mubr.msk.bf16.gmra.mrb[4].mxu0 %vm399_vm2, %v386_v22 }
  0x28   : > { %1284 = vmatprep.mubr.msk.bf16.mxu0 %vm399_vm2, %v387_v23 }
  0x2f   : > { %1285 = vmatmul.mubr.msk.bf16.gmra.mrb[8].mxu0 %vm399_vm2, %v388_v28 }
  0x30   : > { %1288 = vmatprep.mubr.msk.bf16.mxu0 %vm399_vm2, %v389_v29 }
  0x37   : > { %1289 = vmatmul.mubr.msk.bf16.gmra.mrb[12].mxu0 %vm399_vm2, %v390_v32  ;;  %v1504_v32 = vmov 0.0  }
  0x38   : > { %1292 = vmatprep.subr.bf16.mxu0 %v1504_v32  ;;  %1308 = vmatprep.mubr.msk.bf16.mxu0 %vm1505_vm4, %v1504_v32 }
  0x39   : > { %1293 = vmatpush3.bf16.msra.mxu0 %v1392_v31 }
  0x3a   : > { %1294 = vmatprep.subr.bf16.mxu0 %v1504_v32 }
  0x3d   : > { %1295 = vmatpush3.bf16.msra.mxu0 %v1393_v33 }
  0x3e   : > { %1296 = vmatprep.subr.bf16.mxu0 %v1504_v32 }
  0x41   : > { %1297 = vmatpush3.bf16.msra.mxu0 %v1394_v34 }
  0x42   : > { %1298 = vmatprep.subr.bf16.mxu0 %v1504_v32 }
  0x45   : > { %1299 = vmatpush3.bf16.msra.mxu0 %v1395_v35 }
  0x46   : > { %1300 = vmatprep.subr.bf16.mxu0 %v1504_v32 }
  0x49   : > { %1301 = vmatpush3.bf16.msra.mxu0 %v1396_v36 }
  0x4a   : > { %1302 = vmatprep.subr.bf16.mxu0 %v1504_v32 }
  0xf2   : > { %v1278_v39 = vpop.f32.mrb[0].mxu0 }
  0xf3   : > { %v474_v40 = vadd.f32 %v1278_v39, %v1201_v38  ;;  %v465_v41 = vpop.f32.mrb[1].mxu0  ;;  %v1399_v39 = vld [vmem:[%s1926_s4 + $0x48] sm:$0xff]  }
  0xf4   : > { %v466_v42 = vadd.f32 %v1201_v38, %v465_v41  ;;  %v1279_v43 = vpop.f32.mrb[2].mxu0 }
  0xf5   : > { %v477_v44 = vadd.f32 %v1279_v43, %v1201_v38  ;;  %v468_v45 = vpop.f32.mrb[3].mxu0  ;;  %v530_v47 = vmax.f32 %v474_v40, 0.0  ;;  %v562_v40 = vlaneseq  ;;  %v560_v43 = vld [vmem:[%s1928_s6 + $0x1] sm:$0x3] }
  0xf6   : > { %v469_v46 = vadd.f32 %v1201_v38, %v468_v45  ;;  %v528_v49 = vmax.f32 %v466_v42, 0.0 }
  0xf7   : > { %v531_v48 = vmax.f32 %v477_v44, 0.0  ;;  %v563_v41 = vshrl.u32 %v562_v40, 7 }
  0xf8   : > { %v529_v50 = vmax.f32 %v469_v46, 0.0 }
  0xf9   : > { %v545_v51 = vpack.c.bf16 %v531_v48, %v530_v47  ;;  %v568_v42 = vsub.s32 1, %v563_v41 }
  0xfa   : > { %v544_v52 = vpack.c.bf16 %v529_v50, %v528_v49  ;;  %v1282_v53 = vpop.f32.mrb[4].mxu0 }
  0xfb   : > { %v490_v54 = vadd.f32 %v1282_v53, %v1201_v38  ;;  %v481_v55 = vpop.f32.mrb[5].mxu0  ;;  %v1726_v44 = vrot.slane %v560_v43, %v568_v42 }
  0xfc   : > { %1218 = vmatmul.mubr.msk.bf16.vlgmr.msra.gmra.mrb[0].mxu1 %vm612_vm3, %v544_v52  ;;  %v482_v56 = vadd.f32 %v1201_v38, %v481_v55  ;;  %v1283_v57 = vpop.f32.mrb[6].mxu0  ;;  %v564_v52 = vsub.s32 0, %v563_v41 }
  0xfd   : > { %v534_v58 = vmax.f32 %v490_v54, 0.0  ;;  %v493_v59 = vadd.f32 %v1283_v57, %v1201_v38  ;;  %v484_v60 = vpop.f32.mrb[7].mxu0  ;;  %679 = vmatprep.mubr.bf16.mxu1 %v1503_v37 }
  0xfe   : > { %v532_v61 = vmax.f32 %v482_v56, 0.0  ;;  %v485_v62 = vadd.f32 %v1201_v38, %v484_v60 }
  0xff   : > { %v535_v63 = vmax.f32 %v493_v59, 0.0 }
 0x100   : > { %v533_v0 = vmax.f32 %v485_v62, 0.0 }
 0x101   : > { %v547_v1 = vpack.c.bf16 %v535_v63, %v534_v58  ;;  %v1745_v58 = vrot.slane %v560_v43, %v564_v52 }
 0x102   : > { %v546_v2 = vpack.c.bf16 %v533_v0, %v532_v61  ;;  %v1286_v3 = vpop.f32.mrb[8].mxu0 }
 0x103   : > { %v506_v4 = vadd.f32 %v1286_v3, %v1201_v38  ;;  %v497_v5 = vpop.f32.mrb[9].mxu0 }
 0x104   : > { %1219 = vmatmul.mubr.msk.bf16.gmra.mrb[4].mxu1 %vm612_vm3, %v545_v51  ;;  %v498_v6 = vadd.f32 %v1201_v38, %v497_v5  ;;  %v1287_v7 = vpop.f32.mrb[10].mxu0 }
 0x105   : > { %689 = vmatprep.mubr.bf16.mxu1 %v1503_v37  ;;  %v538_v8 = vmax.f32 %v506_v4, 0.0  ;;  %v509_v9 = vadd.f32 %v1287_v7, %v1201_v38  ;;  %v500_v10 = vpop.f32.mrb[11].mxu0 }
 0x106   : > { %v536_v11 = vmax.f32 %v498_v6, 0.0  ;;  %v501_v12 = vadd.f32 %v1201_v38, %v500_v10 }
 0x107   : > { %v539_v13 = vmax.f32 %v509_v9, 0.0 }
 0x108   : > { %v537_v14 = vmax.f32 %v501_v12, 0.0 }
 0x109   : > { %v549_v15 = vpack.c.bf16 %v539_v13, %v538_v8 }
 0x10a   : > { %v548_v16 = vpack.c.bf16 %v537_v14, %v536_v11  ;;  %v1290_v17 = vpop.f32.mrb[12].mxu0 }
 0x10b   : > { %v522_v18 = vadd.f32 %v1290_v17, %v1201_v38  ;;  %v513_v19 = vpop.f32.mrb[13].mxu0 }
 0x10c   : > { %1220 = vmatmul.mubr.msk.bf16.gmra.mrb[8].mxu1 %vm612_vm3, %v546_v2  ;;  %v514_v20 = vadd.f32 %v1201_v38, %v513_v19  ;;  %v1291_v21 = vpop.f32.mrb[14].mxu0 }
 0x10d   : > { %699 = vmatprep.mubr.bf16.mxu1 %v1503_v37  ;;  %v542_v22 = vmax.f32 %v522_v18, 0.0  ;;  %v525_v23 = vadd.f32 %v1291_v21, %v1201_v38  ;;  %v516_v24 = vpop.f32.mrb[15].mxu0 }
 0x10e   : > { %v540_v25 = vmax.f32 %v514_v20, 0.0  ;;  %v517_v26 = vadd.f32 %v1201_v38, %v516_v24  ;;  %v1398_v38 = vld [vmem:[%s1926_s4 + $0x40] sm:$0xff]  }
 0x10f   : > { %v543_v27 = vmax.f32 %v525_v23, 0.0 }
 0x110   : > { %v541_v28 = vmax.f32 %v517_v26, 0.0 }
 0x111   : > { %v551_v29 = vpack.c.bf16 %v543_v27, %v542_v22 }
 0x112   : > { %v550_v30 = vpack.c.bf16 %v541_v28, %v540_v25 }
 0x114   : > { %1221 = vmatmul.mubr.msk.bf16.gmra.mrb[12].mxu1 %vm612_vm3, %v547_v1 }
 0x115   : > { %709 = vmatprep.mubr.bf16.mxu1 %v1503_v37 }
 0x11c   : > { %1222 = vmatmul.mubr.msk.bf16.gmra.mrb[16].mxu1 %vm612_vm3, %v548_v16 }
 0x11d   : > { %719 = vmatprep.mubr.bf16.mxu1 %v1503_v37 }
 0x124   : > { %1223 = vmatmul.mubr.msk.bf16.gmra.mrb[20].mxu1 %vm612_vm3, %v549_v15 }
 0x125   : > { %729 = vmatprep.mubr.bf16.mxu1 %v1503_v37 }
 0x12c   : > { %1224 = vmatmul.mubr.msk.bf16.gmra.mrb[24].mxu1 %vm612_vm3, %v550_v30 }
 0x12d   : > { %739 = vmatprep.mubr.bf16.mxu1 %v1503_v37  ;;  %v1397_v37 = vld [vmem:[%s1926_s4 + $0x38] sm:$0xff]  }
 0x12e   : > { %1303 = vmatpush3.bf16.msra.mxu0 %v1397_v37 }
 0x12f   : > { %1304 = vmatprep.subr.bf16.mxu0 %v1504_v32 }
 0x132   : > { %1305 = vmatpush3.bf16.msra.mxu0 %v1398_v38 }
 0x133   : > { %1306 = vmatprep.subr.bf16.mxu0 %v1504_v32 }
 0x134   : > { %1225 = vmatmul.mubr.msk.bf16.gmra.mrb[28].mxu1 %vm612_vm3, %v551_v29 }
 0x136   : > { %1307 = vmatpush3.bf16.msra.mxu0 %v1399_v39 }
 0x137   : > { %1312 = vmatprep.subr.bf16.mxu0 %v1504_v32 }
 0x1cf   : > { %v671_v45 = vpop.f32.mrb[0].mxu1 }
 0x1d0   : > { %v673_v46 = vpop.f32.mrb[1].mxu1  ;;  %v672_v60 = vadd.f32 %v671_v45, %v1745_v58 }
 0x1d1   : > { %v674_v47 = vadd.f32 %v673_v46, %v1726_v44  ;;  %v675_v48 = vpop.f32.mrb[2].mxu1 }
 0x1d2   : > { %v677_v49 = vpop.f32.mrb[3].mxu1  ;;  %v676_v1 = vadd.f32 %v675_v48, %v1745_v58 }
 0x1d3   : > { %751 = vst.msk [vmem:[%s1733_s24] sm:$0xff] %vm750_vm5, %v674_v47  ;;  %v678_v50 = vadd.f32 %v677_v49, %v1726_v44 }
 0x1d5   : > { %752 = vst.msk [vmem:[%s1733_s24 + $0x8] sm:$0xff] %vm750_vm5, %v678_v50 }
 0x1d7   : > { %v681_v51 = vpop.f32.mrb[4].mxu1 }
 0x1d8   : > { %v683_v53 = vpop.f32.mrb[5].mxu1  ;;  %v682_v8 = vadd.f32 %v681_v51, %v1745_v58 }
 0x1d9   : > { %v684_v54 = vadd.f32 %v683_v53, %v1726_v44  ;;  %v685_v55 = vpop.f32.mrb[6].mxu1 }
 0x1da   : > { %v687_v56 = vpop.f32.mrb[7].mxu1  ;;  %v686_v13 = vadd.f32 %v685_v55, %v1745_v58 }
 0x1db   : > { %753 = vst.msk [vmem:[%s1733_s24 + $0x10] sm:$0xff] %vm750_vm5, %v684_v54  ;;  %v688_v57 = vadd.f32 %v687_v56, %v1726_v44 }
 0x1dd   : > { %754 = vst.msk [vmem:[%s1733_s24 + $0x18] sm:$0xff] %vm750_vm5, %v688_v57 }
 0x1df   : > { %v691_v59 = vpop.f32.mrb[8].mxu1 }
 0x1e0   : > { %v692_v61 = vadd.f32 %v691_v59, %v1745_v58  ;;  %v693_v62 = vpop.f32.mrb[9].mxu1 }
 0x1e1   : > { %v694_v63 = vadd.f32 %v693_v62, %v1726_v44  ;;  %v695_v0 = vpop.f32.mrb[10].mxu1 }
 0x1e2   : > { %v767_v2 = vmax.f32 %v672_v60, %v692_v61  ;;  %v696_v3 = vadd.f32 %v695_v0, %v1745_v58  ;;  %v697_v4 = vpop.f32.mrb[11].mxu1 }
 0x1e3   : > { %755 = vst.msk [vmem:[%s1733_s24 + $0x20] sm:$0xff] %vm750_vm5, %v694_v63  ;;  %v698_v5 = vadd.f32 %v697_v4, %v1726_v44 }
 0x1e4   : > { %v768_v6 = vmax.f32 %v676_v1, %v696_v3 }
 0x1e5   : > { %756 = vst.msk [vmem:[%s1733_s24 + $0x28] sm:$0xff] %vm750_vm5, %v698_v5 }
 0x1e7   : > { %v701_v7 = vpop.f32.mrb[12].mxu1 }
 0x1e8   : > { %v702_v9 = vadd.f32 %v701_v7, %v1745_v58  ;;  %v703_v10 = vpop.f32.mrb[13].mxu1  ;;  %v1401_v7 = vld [vmem:[%s1926_s4 + $0x8] sm:$0xff]  }
 0x1e9   : > { %v704_v11 = vadd.f32 %v703_v10, %v1726_v44  ;;  %v705_v12 = vpop.f32.mrb[14].mxu1  ;;  %v1402_v10 = vld [vmem:[%s1927_s5] sm:$0xff]  }
 0x1ea   : > { %v769_v14 = vmax.f32 %v682_v8, %v702_v9  ;;  %v706_v15 = vadd.f32 %v705_v12, %v1745_v58  ;;  %v707_v16 = vpop.f32.mrb[15].mxu1  ;;  %v789_v8 = vld [vmem:[%s360_s14] sm:$0x1]  ;;  %v1404_v12 = vld [vmem:[%s1927_s5 + $0x10] sm:$0xff]   ;;  %s1506_s14 = smov [#allocation4]  }
 0x1eb   : > { %757 = vst.msk [vmem:[%s1733_s24 + $0x30] sm:$0xff] %vm750_vm5, %v704_v11  ;;  %v708_v17 = vadd.f32 %v707_v16, %v1726_v44  ;;  %v790_v9 = vpack.c.bf16 %v789_v8, %v789_v8  ;;  %v1403_v11 = vld [vmem:[%s1927_s5 + $0x8] sm:$0xff]   ;;  %s1410_s21 = sshll.u32 %s1506_s14, 4  ;;  %s1411_s21 = int_to_ptr.vmem [resolvable:$false] %s1410_s21 }
 0x1ec   : > { %v770_v18 = vmax.f32 %v686_v13, %v706_v15  ;;  %v1405_v13 = vld [vmem:[%s1927_s5 + $0x18] sm:$0xff]   ;;  %s1412_s22 = scalar_lea.vmem %s1411_s21, 32  ;;  %p1413_p0 = scmp.lt.s32.totalorder %s1074_s27, %s1411_s21 }
 0x1ed   : > { %758 = vst.msk [vmem:[%s1733_s24 + $0x38] sm:$0xff] %vm750_vm5, %v708_v17  ;;  %p1414_p1 = scmp.lt.s32.totalorder %s1412_s22, %s1406_s29 }
 0x1ef   : > { %v711_v19 = vpop.f32.mrb[16].mxu1  ;;  %p1415_p2 = por %p1414_p1, %p1413_p0 }
 0x1f0   : > { %v712_v20 = vadd.f32 %v711_v19, %v1745_v58  ;;  %v713_v21 = vpop.f32.mrb[17].mxu1  ;;  %v956_v19 = vld [vmem:[%s1928_s6 + $0x3] sm:$0x1] }
 0x1f1   : > { %v714_v22 = vadd.f32 %v713_v21, %v1726_v44  ;;  %v715_v23 = vpop.f32.mrb[18].mxu1  ;;  %p1416_p3 = pnand %p1415_p2, %p1409_p13 }
 0x1f2   : > { %v771_v24 = vmax.f32 %v767_v2, %v712_v20  ;;  %v716_v25 = vadd.f32 %v715_v23, %v1745_v58  ;;  %v717_v26 = vpop.f32.mrb[19].mxu1 }
 0x1f3   : > { %759 = vst.msk [vmem:[%s1733_s24 + $0x40] sm:$0xff] %vm750_vm5, %v714_v22  ;;  %v718_v27 = vadd.f32 %v717_v26, %v1726_v44 }
 0x1f4   : > { %v772_v28 = vmax.f32 %v768_v6, %v716_v25  ;;  %v1400_v6 = vld [vmem:[%s1926_s4] sm:$0xff]  }
 0x1f5   : > { %760 = vst.msk [vmem:[%s1733_s24 + $0x48] sm:$0xff] %vm750_vm5, %v718_v27 }
 0x1f7   : > { %v721_v29 = vpop.f32.mrb[20].mxu1 }
 0x1f8   : > { %v722_v30 = vadd.f32 %v721_v29, %v1745_v58  ;;  %v723_v31 = vpop.f32.mrb[21].mxu1 }
 0x1f9   : > { %v724_v33 = vadd.f32 %v723_v31, %v1726_v44  ;;  %v725_v34 = vpop.f32.mrb[22].mxu1 }
 0x1fa   : > { %v773_v35 = vmax.f32 %v769_v14, %v722_v30  ;;  %v726_v36 = vadd.f32 %v725_v34, %v1745_v58  ;;  %v727_v37 = vpop.f32.mrb[23].mxu1 }
 0x1fb   : > { %761 = vst.msk [vmem:[%s1733_s24 + $0x50] sm:$0xff] %vm750_vm5, %v724_v33  ;;  %v728_v38 = vadd.f32 %v727_v37, %v1726_v44 }
 0x1fc   : > { %v774_v39 = vmax.f32 %v770_v18, %v726_v36 }
 0x1fd   : > { %762 = vst.msk [vmem:[%s1733_s24 + $0x58] sm:$0xff] %vm750_vm5, %v728_v38 }
 0x1ff   : > { %v731_v40 = vpop.f32.mrb[24].mxu1 }
 0x200   : > { %v732_v41 = vadd.f32 %v731_v40, %v1745_v58  ;;  %v733_v42 = vpop.f32.mrb[25].mxu1 }
 0x201   : > { %v734_v43 = vadd.f32 %v733_v42, %v1726_v44  ;;  %v735_v45 = vpop.f32.mrb[26].mxu1 }
 0x202   : > { %v775_v46 = vmax.f32 %v771_v24, %v732_v41  ;;  %v736_v47 = vadd.f32 %v735_v45, %v1745_v58  ;;  %v737_v48 = vpop.f32.mrb[27].mxu1 }
 0x203   : > { %763 = vst.msk [vmem:[%s1733_s24 + $0x60] sm:$0xff] %vm750_vm5, %v734_v43  ;;  %v738_v49 = vadd.f32 %v737_v48, %v1726_v44 }
 0x204   : > { %v776_v50 = vmax.f32 %v772_v28, %v736_v47 }
 0x205   : > { %764 = vst.msk [vmem:[%s1733_s24 + $0x68] sm:$0xff] %vm750_vm5, %v738_v49 }
 0x206   : > { %v779_v51 = vmax.f32 %v775_v46, %v776_v50 }
 0x207   : > { %v741_v52 = vpop.f32.mrb[28].mxu1 }
 0x208   : > { %v742_v53 = vadd.f32 %v741_v52, %v1745_v58  ;;  %v743_v54 = vpop.f32.mrb[29].mxu1 }
 0x209   : > { %v744_v55 = vadd.f32 %v743_v54, %v1726_v44  ;;  %v745_v56 = vpop.f32.mrb[30].mxu1 }
 0x20a   : > { %v777_v57 = vmax.f32 %v773_v35, %v742_v53  ;;  %v746_v59 = vadd.f32 %v745_v56, %v1745_v58  ;;  %v747_v60 = vpop.f32.mrb[31].mxu1 }
 0x20b   : > { %765 = vst.msk [vmem:[%s1733_s24 + $0x70] sm:$0xff] %vm750_vm5, %v744_v55  ;;  %v748_v61 = vadd.f32 %v747_v60, %v1726_v44 }
 0x20c   : > { %v778_v62 = vmax.f32 %v774_v39, %v746_v59 }
 0x20d   : > { %766 = vst.msk [vmem:[%s1733_s24 + $0x78] sm:$0xff] %vm750_vm5, %v748_v61 }
 0x20e   : > { %v780_v63 = vmax.f32 %v777_v57, %v778_v62 }
 0x210   : > { %v781_v0 = vmax.f32 %v779_v51, %v780_v63 }
 0x212   : > { %v782_v1 = vrot.slane %v781_v0, 4 }
 0x214   : > { %v783_v2 = vmax.f32 %v781_v0, %v782_v1 }
 0x216   : > { %v784_v3 = vrot.slane %v783_v2, 2 }
 0x218   : > { %v785_v4 = vmax.f32 %v783_v2, %v784_v3 }
 0x21a   : > { %v786_v58 = vrot.slane %v785_v4, 1 }
 0x21c   : > { %v787_v5 = vmax.f32 %v785_v4, %v786_v58 }
 0x21e   : > { %v811_v44 = vpack.c.bf16 %v787_v5, %v787_v5  ;;  %788 = vst [vmem:[%s345_s16] sm:$0x1] %v787_v5 }
 0x220   : > { %1309 = vmatmul.mubr.bf16.vlgmr.msra.gmra.mrb[16].mxu0 %v811_v44 }
 0x221   : > { %1313 = vmatpush3.bf16.msra.mxu0 %v1400_v6  ;;  %1316 = vmatprep.mubr.msk.bf16.mxu0 %vm1505_vm4, %v1504_v32 }
 0x222   : > { %1314 = vmatprep.subr.bf16.mxu0 %v1504_v32 }
 0x225   : > { %1315 = vmatpush3.bf16.msra.mxu0 %v1401_v7 }
 0x226   : > { %1320 = vmatprep.subr.bf16.mxu0 %v1504_v32 }
 0x228   : > { %1317 = vmatmul.mubr.msk.bf16.vlgmr.msra.gmra.mrb[20].mxu0 %vm912_vm6, %v790_v9 }
 0x229   : > { %1328 = vmatprep.mubr.msk.bf16.mxu0 %vm1505_vm4, %v1504_v32  ;;  %1321 = vmatpush3.bf16.msra.mxu0 %v1402_v10 }
 0x22a   : > { %1322 = vmatprep.subr.bf16.mxu0 %v1504_v32 }
 0x22d   : > { %1323 = vmatpush3.bf16.msra.mxu0 %v1403_v11 }
 0x22e   : > { %1324 = vmatprep.subr.bf16.mxu0 %v1504_v32 }
 0x231   : > { %1325 = vmatpush3.bf16.msra.mxu0 %v1404_v12 }
 0x232   : > { %1326 = vmatprep.subr.bf16.mxu0 %v1504_v32 }
 0x235   : > { %1327 = vmatpush3.bf16.msra.mxu0 %v1405_v13 }
 0x2f3   : > { %v894_v14 = vpop.f32.mrb[16].mxu0 }
 0x2f4   : > { %v1310_v15 = vpop.f32.mrb[17].mxu0 }
 0x2f5   : > { %v897_v16 = vpop.f32.mrb[18].mxu0 }
 0x2f6   : > { %v1311_v17 = vpop.f32.mrb[19].mxu0 }
 0x2fb   : > { %v950_v18 = vpop.f32.mrb[20].mxu0 }
 0x2fc   : > { %v951_v32 = vadd.f32 %v950_v18, %v894_v14  ;;  %v1318_v20 = vpop.f32.mrb[21].mxu0 }
 0x2fd   : > { %v953_v21 = vpop.f32.mrb[22].mxu0 }
 0x2fe   : > { %v957_v22 = vadd.f32 %v956_v19, %v951_v32  ;;  %v1319_v23 = vpop.f32.mrb[23].mxu0 }
 0x300   : > { %v958_v24 = vmax.f32 %v957_v22, 0.0 }
 0x302   : > { %v959_v25 = vpack.c.bf16 %v958_v24, %v958_v24 }
 0x304   : > { %1329 = vmatmul.mubr.msk.bf16.vlgmr.msra.gmra.mrb[24].mxu0 %vm612_vm3, %v959_v25 }
 0x305   : > { %1419 = shalt.err (!%p1416_p3)
}
 0x306   : > { %s1420_s16 = scalar_lea.hbm %s1848_s26, 16  ;;  %s1424_s14 = scalar_lea.hbm %s1930_s8, 32 }
 0x307   : > { %p1421_p4 = scmp.ne.s32.totalorder %s1848_s26, %s1420_s16  ;;  %p1425_p9 = scmp.lt.u32.totalorder %s1848_s26, %s1930_s8 }
 0x308   : > { %p1426_p10 = scmp.lt.u32.totalorder %s1424_s14, %s1420_s16  ;;  %p1428_p12 = scmp.lt.u32.totalorder %s1420_s16, %s1848_s26 }
 0x309   : > { %p1422_p7 = pnand %p1421_p4, %p1596_p5 }
 0x30a   : > { %p1427_p11 = por %p1426_p10, %p1425_p9 }
 0x30b   : > { %p1423_p8 = pneg %p1422_p7 }
 0x30c   : > { %p1429_p13 = por %p1428_p12, %p1427_p11 }
 0x30e   : > { %p1430_p0 = pnand %p1429_p13, %p1423_p8 }
 0x310   : > { %1433 = shalt.err (!%p1430_p0)
}
 0x311   : > { %1333 = dma.vmem_to_hbm [thread:$0]  (%p1596_p5), %s1074_s27, 16, %s1848_s26, %s1043_s28   ;;  %v968_v26 = vld [vmem:[%s1928_s6 + $0x4] sm:$0x1]  ;;  %vm1036_vm7 = vcmask 57344  }
 0x312   : > { %s339_s25 = scalar_lea.vmem [#allocation2], %s1802_s17  ;;  %s1935_s16 = sshll.u32 %s1579_s13, 4 }
 0x313   : > { %s1060_s23 = sshll.u32 %s339_s25, 4  ;;  %s1879_s21 = scalar_lea.hbm %s1929_s7, %s1935_s16  ;;  %s1881_s23 = int_to_ptr.vmem [resolvable:$true] %s1060_s23 }
 0x314   : > { %s1039_s26 = scalar_lea.sflag [#allocation3], %s1802_s17  ;;  %s1434_s27 = scalar_lea.vmem %s1881_s23, 16 }
 0x315   : > { %p1435_p1 = scmp.ne.s32.totalorder %s1881_s23, %s1434_s27  ;;  %s1507_s13 = smov [#allocation2]  }
 0x316   : > { %s1438_s28 = sshll.u32 %s1507_s13, 4  ;;  %s1439_s28 = int_to_ptr.vmem [resolvable:$false] %s1438_s28 }
 0x317   : > { %p1436_p2 = pnand %p1435_p1, %p1596_p5  ;;  %s1440_s29 = scalar_lea.vmem %s1439_s28, 32 }
 0x318   : > { %p1441_p4 = scmp.lt.s32.totalorder %s1881_s23, %s1439_s28  ;;  %p1442_p7 = scmp.lt.s32.totalorder %s1440_s29, %s1434_s27 }
 0x319   : > { %p1437_p3 = pneg %p1436_p2 }
 0x31a   : > { %p1443_p8 = por %p1442_p7, %p1441_p4 }
 0x31c   : > { %p1444_p9 = pnand %p1443_p8, %p1437_p3 }
 0x3d7   : > { %v1030_v27 = vpop.f32.mrb[24].mxu0 }
 0x3d8   : > { %v1031_v28 = vadd.f32 %v1030_v27, %v968_v26  ;;  %v1330_v29 = vpop.f32.mrb[25].mxu0 }
 0x3d9   : > { %v1033_v30 = vpop.f32.mrb[26].mxu0 }
 0x3da   : > { %v1331_v31 = vpop.f32.mrb[27].mxu0  ;;  %1037 = vst.msk [vmem:[%s339_s25] sm:$0x1] %vm1036_vm7, %v1031_v28 }
 0x3db   : > { %1447 = shalt.err (!%p1444_p9)
}
 0x3dc   : > { %s1448_s17 = scalar_lea.hbm %s1879_s21, 16  ;;  %s1452_s16 = scalar_lea.hbm %s1929_s7, 32 }
 0x3dd   : > { %p1449_p10 = scmp.ne.s32.totalorder %s1879_s21, %s1448_s17  ;;  %p1453_p13 = scmp.lt.u32.totalorder %s1879_s21, %s1929_s7 }
 0x3de   : > { %p1454_p0 = scmp.lt.u32.totalorder %s1452_s16, %s1448_s17  ;;  %p1456_p2 = scmp.lt.u32.totalorder %s1448_s17, %s1879_s21 }
 0x3df   : > { %p1450_p11 = pnand %p1449_p10, %p1596_p5 }
 0x3e0   : > { %p1455_p1 = por %p1454_p0, %p1453_p13 }
 0x3e1   : > { %p1451_p12 = pneg %p1450_p11 }
 0x3e2   : > { %p1457_p3 = por %p1456_p2, %p1455_p1 }
 0x3e4   : > { %p1458_p4 = pnand %p1457_p3, %p1451_p12 }
 0x3e6   : > { %1461 = shalt.err (!%p1458_p4)
}
 0x3e7   : > { %1332 = dma.vmem_to_hbm [thread:$0]  (%p1596_p5), %s1881_s23, 16, %s1879_s21, %s1039_s26  }
 0x3e8 PF: > { %p1343_p7 = scmp.ge.s32.totalorder %s1500_s12, 2  ;;  %s1088_s27 = sand.u32 1, %s1488_s30  }
 0x3e9   : > { %s1089_s13 = scalar_lea.sflag [#allocation3], %s1088_s27 }
 0x3ea   : > { %p1337_p8 = pnand %p1343_p7, %p1600_p6 }
 0x3ec   : > { %1479 = dma.done.wait (!%p1337_p8), %s1089_s13, 16  }
 0x3ed   : > { %1481 = vsyncadd (!%p1337_p8), %s1089_s13, 4294967280  ;;  %s1097_s28 = scalar_lea.sflag [#allocation5], %s1088_s27 }
 0x3ee   : > { %1483 = dma.done.wait (!%p1337_p8), %s1097_s28, 16  }
 0x3ef   : > { %1485 = vsyncadd (!%p1337_p8), %s1097_s28, 4294967280  ;;  %p23_p5 = scmp.ge.s32.totalorder %s1583_s15, 4   ;;  %s1936_s30 = smov %s1492_s10 }
 0x3f0   : > { %s1937_s10 = smov %s1496_s11  ;;  %s1938_s11 = smov %s1594_s18 }
 0x3f1   : > { %s1939_s12 = smov %s1583_s15  ;;  %25 = sbr.rel (!%p23_p5) target bundleno = 5 (0x5), region = 115 }
 0x3f8   :  { %1109 = vsyncpa [#allocation3], 1 }
 0x3f9   :  { %1111 = vsyncpa [#allocation3 + $0x1], 1 }
 0x3fa   :  { %1112 = vsyncpa [#allocation5], 1 }
 0x3fb   :  { %1114 = vsyncpa [#allocation5 + $0x1], 1 }

</bundles_post_ra>
